<compile_context>
chip_gen: v5e
topology: v5e:2x2
jax: 0.10.0
libtpu: 0.0.40
codegen_flags: <defaults>
</compile_context>

<pallas_src>
import functools

import jax
import jax.numpy as jnp
from jax import lax
from jax.experimental import pallas as pl
from jax.experimental.pallas import tpu as pltpu


def _tversky_stats_kernel(preds_ref, targets_ref, out_ref, *, hw, tn, needs_mask):
    """Accumulate per-class [tp, sum_p, pos] over pixel tiles of one image.

    preds_ref:   (C, TN)  logits tile          (channels on sublanes)
    targets_ref: (1, TN)  int32 labels tile
    out_ref:     (C, 3)   float32 running sums (resident across the pixel axis)
    """
    i = pl.program_id(1)

    @pl.when(i == 0)
    def _():
        out_ref[...] = jnp.zeros_like(out_ref)

    x = preds_ref[...].astype(jnp.float32)                    # (C, TN)

    # Softmax over the channel (sublane) axis.
    m = jnp.max(x, axis=0, keepdims=True)                     # (1, TN)
    e = jnp.exp(x - m)                                        # (C, TN)  (EUP)
    denom = jnp.sum(e, axis=0, keepdims=True)                 # (1, TN)
    inv = pl.reciprocal(denom, approx=True)                   # EUP estimate
    inv = inv * (2.0 - denom * inv)                           # 1 Newton step -> ~exact
    p = e * inv                                               # (C, TN)

    t = targets_ref[...]                                      # (1, TN) int32
    class_ids = lax.broadcasted_iota(jnp.int32, p.shape, 0)   # (C, TN)
    tgt = (t == class_ids).astype(jnp.float32)                # one-hot, (C, TN)

    if needs_mask:
        # Zero out the padded tail of the pixel axis (only traced when needed).
        lane = lax.broadcasted_iota(jnp.int32, (1, tn), 1)    # (1, TN)
        valid = ((i * tn + lane) < hw).astype(jnp.float32)
        p = p * valid
        tgt = tgt * valid

    tp = jnp.sum(p * tgt, axis=1, keepdims=True)              # (C, 1)
    sp = jnp.sum(p, axis=1, keepdims=True)                    # (C, 1)
    pos = jnp.sum(tgt, axis=1, keepdims=True)                 # (C, 1)

    out_ref[...] += jnp.concatenate([tp, sp, pos], axis=1)    # (C, 3)


def _round_up(a, m):
    return (a + m - 1) // m * m


def _choose_tile(hw_pad_min, c):
    """Largest 128-aligned tile dividing hw_pad_min that fits the VMEM budget."""
    # Rough per-lane-element VMEM estimate: double-buffered inputs
    # (2*(C+1) f32 words) plus ~6 full-width f32 temporaries (e, p, tgt, ...).
    bytes_per_lane = 4 * (2 * c + 2) + 4 * 6 * c
    budget = 24 * 1024 * 1024          # conservative: fits v5e / v6e / v7x
    tn_cap = max(128, (budget // bytes_per_lane) // 128 * 128)
    candidates = sorted(
        {cand for cand in
         (hw_pad_min, 131072, 65536, 32768, 16384, 8192, 4096,
          2048, 1024, 512, 256, 128)
         if cand <= tn_cap and cand % 128 == 0},
        reverse=True)
    for cand in candidates:
        if hw_pad_min % cand == 0:
            return cand
    return 128


@functools.partial(jax.jit, static_argnames=("fp_imp", "fn_imp", "equalize", "smooth"))
def tversky_loss(preds, targets, *, fp_imp=0.5, fn_imp=0.5,
                 equalize=False, smooth=1e-6):
    # Match torch: a 3-D preds tensor gets a batch dim added.
    if preds.ndim == 3:
        preds = preds[None]
    B, C, H, W = preds.shape
    HW = H * W
    n_pix = B * HW

    # Free reshapes only — no NCHW transpose / extra HBM copy.
    preds_f = preds.reshape(B, C, HW)
    targets_f = targets.reshape(B, 1, HW).astype(jnp.int32)

    hw_pad_min = _round_up(HW, 128)
    TN = _choose_tile(hw_pad_min, C)
    HW_pad = _round_up(HW, TN)
    needs_mask = HW_pad != HW
    if needs_mask:
        pad = HW_pad - HW
        preds_f = jnp.pad(preds_f, ((0, 0), (0, 0), (0, pad)))
        targets_f = jnp.pad(targets_f, ((0, 0), (0, 0), (0, pad)))

    grid = (B, HW_pad // TN)
    kernel = functools.partial(_tversky_stats_kernel, hw=HW, tn=TN,
                               needs_mask=needs_mask)

    stats = pl.pallas_call(
        kernel,
        out_shape=jax.ShapeDtypeStruct((B, C, 3), jnp.float32),
        grid_spec=pltpu.PrefetchScalarGridSpec(
            num_scalar_prefetch=0,
            grid=grid,
            in_specs=[
                pl.BlockSpec((pl.Squeezed(), C, TN), lambda b, i: (b, 0, i)),
                pl.BlockSpec((pl.Squeezed(), 1, TN), lambda b, i: (b, 0, i)),
            ],
            out_specs=pl.BlockSpec((pl.Squeezed(), C, 3), lambda b, i: (b, 0, 0)),
        ),
        compiler_params=pltpu.CompilerParams(
            # Batch axis is parallel (megacore / v7x); pixel axis is the
            # accumulation axis and must stay arbitrary.
            dimension_semantics=("parallel", "arbitrary"),
            vmem_limit_bytes=48 * 1024 * 1024,
        ),
    )(preds_f, targets_f)

    stats = jnp.sum(stats, axis=0)            # (C, 3): sum partials over images
    tp = stats[:, 0]
    sp = stats[:, 1]
    pos = stats[:, 2]
    fn = pos - tp                             # == sum((1 - p) * tgt)
    fp = sp - tp                              # == sum(p * (1 - tgt))
    neg = jnp.float32(n_pix) - pos            # == sum(1 - tgt)

    if equalize:
        # NOTE: like the PyTorch original, a class absent from the batch
        # (pos == 0) yields inf/nan here.
        tp = tp / pos
        fn = fn / pos
        fp = fp / neg

    tversky_index = (tp + smooth) / (tp + fp_imp * fp + fn_imp * fn + smooth)
    tversky_index_sum = jnp.sum(tversky_index[1:])   # classes 1..C-1 (skip background)
    return 1.0 - tversky_index_sum / (C - 1)


def _tversky_loss_ref(preds, targets, fp_imp=0.5, fn_imp=0.5,
                      equalize=False, smooth=1e-6):
    """Pure-JAX reference mirroring the PyTorch loop (intended semantics)."""
    if preds.ndim == 3:
        preds = preds[None]
    p = jax.nn.softmax(preds.astype(jnp.float32), axis=1)
    C = preds.shape[1]
    s = 0.0
    for c in range(1, C):
        pred_flat = p[:, c, :, :].reshape(-1)
        tgt = (targets == c).astype(jnp.float32).reshape(-1)
        inv = 1.0 - tgt
        tp = jnp.sum(pred_flat * tgt)
        fn = jnp.sum((1.0 - pred_flat) * tgt)
        fp = jnp.sum(pred_flat * inv)
        if equalize:
            tp = tp / jnp.sum(tgt)
            fn = fn / jnp.sum(tgt)
            fp = fp / jnp.sum(inv)
        s = s + (tp + smooth) / (tp + fp_imp * fp + fn_imp * fn + smooth)
    return 1.0 - s / (C - 1)


if __name__ == "__main__":
    key = jax.random.PRNGKey(0)
    k_pred, k_tgt = jax.random.split(key)

    B, C, H, W = 2, 4, 16, 16
    preds = jax.random.normal(k_pred, (B, C, H, W), dtype=jnp.float32)
    targets = jax.random.randint(k_tgt, (B, H, W), 0, C, dtype=jnp.int32)

    loss = tversky_loss(preds, targets, fp_imp=0.5, fn_imp=0.5,
                        equalize=False, smooth=1e-6)
    loss = jax.block_until_ready(loss)

    ref = _tversky_loss_ref(preds, targets)
    assert jnp.allclose(loss, ref, atol=1e-4, rtol=1e-4), (loss, ref)

    print("KERNEL_OK")
</pallas_src>

<mosaic_0001>
module attributes {stable_mosaic.version = 11 : i64} {
  func.func @_tversky_stats_kernel(%arg0: i32, %arg1: i32, %arg2: memref<1x4x256xf32, #tpu.memory_space<vmem>>, %arg3: memref<1x1x256xi32, #tpu.memory_space<vmem>>, %arg4: memref<1x4x3xf32, #tpu.memory_space<vmem>>) attributes {dimension_semantics = [#tpu.dimension_semantics<parallel>, #tpu.dimension_semantics<arbitrary>], iteration_bounds = array<i64: 2, 1>, scalar_prefetch = 0 : i64, scratch_operands = 0 : i64, tpu.core_type = #tpu.core_type<tc>, window_params = [{transform_indices = @transform_0, window_bounds = array<i64: 1, 4, 256>}, {transform_indices = @transform_1, window_bounds = array<i64: 1, 1, 256>}, {transform_indices = @transform_2, window_bounds = array<i64: 1, 4, 3>}]} {
    %c0_i32 = arith.constant 0 : i32
    %0 = arith.cmpi eq, %arg1, %c0_i32 : i32
    %1 = arith.extui %0 : i1 to i32
    %c0_i32_0 = arith.constant 0 : i32
    %2 = arith.cmpi ne, %1, %c0_i32_0 : i32
    scf.if %2 {
      %cst_17 = arith.constant 0.000000e+00 : f32
      %40 = vector.broadcast %cst_17 : f32 to vector<4x3xf32>
      %c0_18 = arith.constant 0 : index
      %c0_19 = arith.constant 0 : index
      %c0_20 = arith.constant 0 : index
      %41 = vector.load %arg4[%c0_18, %c0_19, %c0_20] : memref<1x4x3xf32, #tpu.memory_space<vmem>>, vector<1x4x3xf32>
      %42 = vector.shape_cast %41 : vector<1x4x3xf32> to vector<4x3xf32>
      %43 = vector.shape_cast %40 : vector<4x3xf32> to vector<1x4x3xf32>
      tpu.vector_store %arg4[%c0_18, %c0_19, %c0_20], %43 {strides = array<i32>} : memref<1x4x3xf32, #tpu.memory_space<vmem>>, vector<1x4x3xf32>,
    } else {
    }
    %c0 = arith.constant 0 : index
    %c0_1 = arith.constant 0 : index
    %c0_2 = arith.constant 0 : index
    %3 = vector.load %arg2[%c0, %c0_1, %c0_2] : memref<1x4x256xf32, #tpu.memory_space<vmem>>, vector<1x4x256xf32>
    %4 = vector.shape_cast %3 : vector<1x4x256xf32> to vector<4x256xf32>
    %cst = arith.constant dense<0xFF800000> : vector<256xf32>
    %5 = vector.multi_reduction <maximumf>, %4, %cst [0] : vector<4x256xf32> to vector<256xf32>
    %6 = vector.shape_cast %5 : vector<256xf32> to vector<1x256xf32>
    %7 = vector.broadcast %6 : vector<1x256xf32> to vector<4x256xf32>
    %8 = arith.subf %4, %7 : vector<4x256xf32>
    %9 = math.exp %8 : vector<4x256xf32>
    %cst_3 = arith.constant dense<0.000000e+00> : vector<256xf32>
    %10 = vector.multi_reduction <add>, %9, %cst_3 [0] : vector<4x256xf32> to vector<256xf32>
    %11 = vector.shape_cast %10 : vector<256xf32> to vector<1x256xf32>
    %12 = tpu.reciprocal %11 {approx = true} : vector<1x256xf32> -> vector<1x256xf32>
    %13 = arith.mulf %11, %12 : vector<1x256xf32>
    %cst_4 = arith.constant 2.000000e+00 : f32
    %14 = vector.broadcast %cst_4 : f32 to vector<1x256xf32>
    %15 = arith.subf %14, %13 : vector<1x256xf32>
    %16 = arith.mulf %12, %15 : vector<1x256xf32>
    %17 = vector.broadcast %16 : vector<1x256xf32> to vector<4x256xf32>
    %18 = arith.mulf %9, %17 : vector<4x256xf32>
    %c0_5 = arith.constant 0 : index
    %c0_6 = arith.constant 0 : index
    %c0_7 = arith.constant 0 : index
    %19 = vector.load %arg3[%c0_5, %c0_6, %c0_7] : memref<1x1x256xi32, #tpu.memory_space<vmem>>, vector<1x1x256xi32>
    %20 = vector.shape_cast %19 : vector<1x1x256xi32> to vector<1x256xi32>
    %21 = tpu.iota {dimensions = array<i32: 0>} : vector<4x256xi32>
    %22 = vector.broadcast %20 : vector<1x256xi32> to vector<4x256xi32>
    %23 = arith.cmpi eq, %22, %21 : vector<4x256xi32>
    %24 = arith.extui %23 : vector<4x256xi1> to vector<4x256xi32>
    %25 = arith.sitofp %24 : vector<4x256xi32> to vector<4x256xf32>
    %26 = arith.mulf %18, %25 : vector<4x256xf32>
    %cst_8 = arith.constant dense<0.000000e+00> : vector<4xf32>
    %27 = vector.multi_reduction <add>, %26, %cst_8 [1] : vector<4x256xf32> to vector<4xf32>
    %28 = vector.shape_cast %27 : vector<4xf32> to vector<4x1xf32>
    %cst_9 = arith.constant dense<0.000000e+00> : vector<4xf32>
    %29 = vector.multi_reduction <add>, %18, %cst_9 [1] : vector<4x256xf32> to vector<4xf32>
    %30 = vector.shape_cast %29 : vector<4xf32> to vector<4x1xf32>
    %cst_10 = arith.constant dense<0.000000e+00> : vector<4xf32>
    %31 = vector.multi_reduction <add>, %25, %cst_10 [1] : vector<4x256xf32> to vector<4xf32>
    %32 = vector.shape_cast %31 : vector<4xf32> to vector<4x1xf32>
    %c0_11 = arith.constant 0 : index
    %c0_12 = arith.constant 0 : index
    %c0_13 = arith.constant 0 : index
    %33 = vector.load %arg4[%c0_11, %c0_12, %c0_13] : memref<1x4x3xf32, #tpu.memory_space<vmem>>, vector<1x4x3xf32>
    %34 = vector.shape_cast %33 : vector<1x4x3xf32> to vector<4x3xf32>
    %35 = tpu.concatenate %28, %30, %32 in 1 : vector<4x1xf32>, vector<4x1xf32>, vector<4x1xf32> -> vector<4x3xf32>
    %36 = arith.addf %34, %35 : vector<4x3xf32>
    %c0_14 = arith.constant 0 : index
    %c0_15 = arith.constant 0 : index
    %c0_16 = arith.constant 0 : index
    %37 = vector.load %arg4[%c0_14, %c0_15, %c0_16] : memref<1x4x3xf32, #tpu.memory_space<vmem>>, vector<1x4x3xf32>
    %38 = vector.shape_cast %37 : vector<1x4x3xf32> to vector<4x3xf32>
    %39 = vector.shape_cast %36 : vector<4x3xf32> to vector<1x4x3xf32>
    tpu.vector_store %arg4[%c0_14, %c0_15, %c0_16], %39 {strides = array<i32>} : memref<1x4x3xf32, #tpu.memory_space<vmem>>, vector<1x4x3xf32>,
    return
  }
  func.func @transform_0(%arg0: i32, %arg1: i32) -> (i32, i32, i32) {
    %c0_i32 = arith.constant 0 : i32
    %c0_i32_0 = arith.constant 0 : i32
    return %arg0, %c0_i32, %arg1 : i32, i32, i32
  }
  func.func @transform_1(%arg0: i32, %arg1: i32) -> (i32, i32, i32) {
    %c0_i32 = arith.constant 0 : i32
    %c0_i32_0 = arith.constant 0 : i32
    return %arg0, %c0_i32, %arg1 : i32, i32, i32
  }
  func.func @transform_2(%arg0: i32, %arg1: i32) -> (i32, i32, i32) {
    %c0_i32 = arith.constant 0 : i32
    %c0_i32_0 = arith.constant 0 : i32
    %c0_i32_1 = arith.constant 0 : i32
    return %arg0, %c0_i32, %c0_i32_0 : i32, i32, i32
  }
}

</mosaic_0001>

<bundles_post_ra>
// kernel: tversky_loss.1
= control target key start
LH: loop header
LB: loop body
LE: loop exit
PB: predicated region body
PF: predicated region fallthrough
CT: control target
= control target key end

     0   :  { %s492_s9 = smov 0   ;;  %s494_s10 = smov 0   ;;  %s546_s0 = inlined_call_operand.vmem [shape: f32[2,4,256], index: 0, kind: input, shape index: {}]   ;;  %s547_s1 = inlined_call_operand.vmem [shape: s32[2,1,256], index: 1, kind: input, shape index: {}]   ;;  %s548_s2 = inlined_call_operand.vmem [shape: f32[2,4,3], index: 2, kind: output, shape index: {}]  }
   0x1   :  { %s496_s11 = smov 0  }
   0x2 LB: > { %s24_s12 = sadd.s32 1, %s470_s10  ;;  %p411_p0 = scmp.ge.s32.totalorder %s474_s11, 1  ;;  %s474_s11 = sphi %s496_s11, %s12_s11   ;;  %s470_s10 = sphi %s494_s10, %s550_s10   ;;  %s466_s9 = sphi %s492_s9, %s549_s9  }
   0x3   : > { %p26_p1 = scmp.ge.s32.totalorder %s24_s12, 2  ;;  %p147_p2 = scmp.lt.s32.totalorder %s474_s11, 3 }
   0x5   : > { %s552_s12 = smov (%p26_p1, %s24_s12), 0  ;;  %p148_p3 = pnand %p411_p0, %p147_p2 }
   0x6   : > { %p181_p4 = scmp.lt.s32.totalorder (!%p148_p3), %s466_s9, 1 }
   0x7   : > { %151 = sbr.rel (%p148_p3) target bundleno = 233 (0xe9), region = 28 }
   0xc   : > { %s554_s9 = smov (!%p181_p4, %s466_s9), 1  ;;  %vm216_vm0 = vcmask 1043456   ;;  %v274_v32 = vlaneseq  ;;  %v476_v43 = vmov 0.0   ;;  %vm207_vm3 = vcmask 19456  }
   0xd   : > { %s420_s13 = sshll.u32 %s554_s9, 3  ;;  %s414_s17 = sshll.u32 %s554_s9, 1  ;;  %vm318_vm4 = vcmask 7168   ;;  %vm320_vm5 = vcmask 15360  }
   0xe   : > { %s188_s16 = scalar_lea.vmem %s546_s0, %s420_s13  ;;  %s197_s20 = scalar_lea.vmem %s547_s1, %s414_s17  ;;  %v275_v38 = vshrl.u32 %v274_v32, 7 }
   0xf   : > { %v209_v0 = vld [vmem:[%s188_s16] sm:$0xff]  ;;  %s415_s21 = sshll.u32 %s554_s9, 2 }
  0x10   : > { %211 = vst [vmem:[#allocation1] ss:$2 sm:$0xff] %v209_v0  ;;  %v273_v35 = vld [vmem:[%s197_s20] sm:$0x3]  ;;  %s202_s24 = scalar_lea.vmem %s548_s2, %s415_s21 }
  0x11   : > { %v276_v41 = vperm.slane %v273_v35, 0  ;;  %v277_v42 = vperm.slane %v273_v35, 1  ;;  %208 = vst.msk [vmem:[%s202_s24] sm:$0xf] %vm207_vm3, %v476_v43 }
  0x13   : > { %vm278_vm1 = vcmp.eq.s32.totalorder %v276_v41, %v275_v38  ;;  %vm279_vm2 = vcmp.eq.s32.totalorder %v277_v42, %v275_v38 }
  0x14   : > { %v416_v44 = vsel %vm278_vm1, 1.0, %v476_v43  ;;  %v417_v45 = vsel %vm279_vm2, 1.0, %v476_v43 }
  0x15   : > { %v312_v47 = vsel %vm216_vm0, %v416_v44, 0.0  ;;  %v313_v48 = vsel %vm216_vm0, %v417_v45, 0.0  ;;  %v286_v57 = vrot.slane %v417_v45, 4 }
  0x16   : > { %v314_v51 = vadd.f32 %v313_v48, %v312_v47 }
  0x17   : > { %v212_v1 = vld.sshfl [vmem:[#allocation1] sm:$0xff pattern:$0x75316420]  ;;  %v213_v2 = vld.sshfl [vmem:[#allocation1 + $0x8] sm:$0xff pattern:$0x75316420]  ;;  %v287_v60 = vsel %vm216_vm0, %v416_v44, %v286_v57 }
  0x18   : > { %v217_v3 = vsel %vm216_vm0, %v212_v1, -inf  ;;  %v224_v4 = vsel %vm216_vm0, %v213_v2, -inf  ;;  %315 = vadd.xlane.f32.xlu1 %v314_v51 }
  0x19   : > { %v218_v5 = vrot.slane %v217_v3, 4  ;;  %v225_v6 = vrot.slane %v224_v4, 4 }
  0x1b   : > { %v219_v7 = vmax.f32 %v217_v3, %v218_v5  ;;  %v226_v8 = vmax.f32 %v224_v4, %v225_v6 }
  0x1d   : > { %v220_v9 = vrot.slane %v219_v7, 2  ;;  %v227_v10 = vrot.slane %v226_v8, 2 }
  0x1f   : > { %v221_v11 = vmax.f32 %v219_v7, %v220_v9  ;;  %v228_v12 = vmax.f32 %v226_v8, %v227_v10 }
  0x21   : > { %v222_v13 = vrot.slane %v221_v11, 1  ;;  %v229_v14 = vrot.slane %v228_v12, 1 }
  0x23   : > { %v223_v15 = vmax.f32 %v221_v11, %v222_v13  ;;  %v230_v16 = vmax.f32 %v228_v12, %v229_v14  ;;  %v317_v12 = vld [vmem:[%s202_s24] sm:$0xf] }
  0x25   : > { %v233_v17 = vrot.slane %v230_v16, 4 }
  0x27   : > { %v234_v18 = vsel %vm216_vm0, %v223_v15, %v233_v17 }
  0x28   : > { %v236_v19 = vsub.f32 %v209_v0, %v234_v18 }
  0x2a   : > { %v237_v20 = vmul.f32 1.442695, %v236_v19 }
  0x2c   : > { %446 = vpow2.f32 %v237_v20 }
  0x32   : > { %v447_v21 = vpop.eup %446 }
  0x33   : > { %240 = vst [vmem:[#allocation1] ss:$2 sm:$0xff] %v447_v21 }
  0x3a   : > { %v241_v22 = vld.sshfl [vmem:[#allocation1] sm:$0xff pattern:$0x75316420]  ;;  %v242_v23 = vld.sshfl [vmem:[#allocation1 + $0x8] sm:$0xff pattern:$0x75316420] }
  0x3b   : > { %v245_v24 = vsel %vm216_vm0, %v241_v22, 0.0  ;;  %v252_v25 = vsel %vm216_vm0, %v242_v23, 0.0 }
  0x3c   : > { %v246_v26 = vrot.slane %v245_v24, 4  ;;  %v253_v27 = vrot.slane %v252_v25, 4 }
  0x3e   : > { %v247_v28 = vadd.f32 %v246_v26, %v245_v24  ;;  %v254_v29 = vadd.f32 %v253_v27, %v252_v25 }
  0x40   : > { %v248_v30 = vrot.slane %v247_v28, 2  ;;  %v255_v31 = vrot.slane %v254_v29, 2 }
  0x42   : > { %v249_v33 = vadd.f32 %v248_v30, %v247_v28  ;;  %v256_v34 = vadd.f32 %v255_v31, %v254_v29 }
  0x44   : > { %v250_v36 = vrot.slane %v249_v33, 1  ;;  %v257_v37 = vrot.slane %v256_v34, 1 }
  0x46   : > { %v251_v39 = vadd.f32 %v250_v36, %v249_v33  ;;  %v258_v40 = vadd.f32 %v257_v37, %v256_v34 }
  0x48   : > { %448 = vrcp.f32 %v251_v39 }
  0x49   : > { %450 = vrcp.f32 %v258_v40 }
  0x4e   : > { %v449_v46 = vpop.eup %448 }
  0x4f   : > { %v451_v49 = vpop.eup %450  ;;  %v261_v50 = vmul.f32 %v449_v46, %v251_v39 }
  0x50   : > { %v262_v52 = vmul.f32 %v451_v49, %v258_v40 }
  0x51   : > { %v263_v53 = vsub.f32 2.0, %v261_v50 }
  0x52   : > { %v264_v54 = vsub.f32 2.0, %v262_v52 }
  0x53   : > { %v265_v55 = vmul.f32 %v449_v46, %v263_v53 }
  0x54   : > { %v266_v56 = vmul.f32 %v451_v49, %v264_v54 }
  0x56   : > { %v269_v58 = vrot.slane %v266_v56, 4 }
  0x58   : > { %v270_v59 = vsel %vm216_vm0, %v265_v55, %v269_v58 }
  0x59   : > { %v272_v61 = vmul.f32 %v447_v21, %v270_v59 }
  0x5b   : > { %v289_v62 = vmul.f32 %v287_v60, %v272_v61 }
  0x5d   : > { %291 = vst [vmem:[#allocation1] ss:$2 sm:$0xff] %v289_v62 }
  0x64   : > { %v292_v63 = vld.sshfl [vmem:[#allocation1] sm:$0xff pattern:$0x75316420]  ;;  %v293_v0 = vld.sshfl [vmem:[#allocation1 + $0x8] sm:$0xff pattern:$0x75316420] }
  0x65   : > { %v296_v1 = vsel %vm216_vm0, %v292_v63, 0.0  ;;  %v297_v2 = vsel %vm216_vm0, %v293_v0, 0.0  ;;  %302 = vst [vmem:[#allocation1] ss:$2 sm:$0xff] %v272_v61 }
  0x66   : > { %v298_v3 = vadd.f32 %v297_v2, %v296_v1 }
  0x68   : > { %299 = vadd.xlane.f32.xlu0 %v298_v3 }
  0x6c   : > { %v303_v4 = vld.sshfl [vmem:[#allocation1] sm:$0xff pattern:$0x75316420]  ;;  %v304_v5 = vld.sshfl [vmem:[#allocation1 + $0x8] sm:$0xff pattern:$0x75316420] }
  0x6d   : > { %v307_v6 = vsel %vm216_vm0, %v303_v4, 0.0  ;;  %v308_v7 = vsel %vm216_vm0, %v304_v5, 0.0 }
  0x6e   : > { %v309_v8 = vadd.f32 %v308_v7, %v307_v6 }
  0x70   : > { %310 = vadd.xlane.f32.xlu0 %v309_v8 }
  0x8b   : > { %v316_v10 = vpop.xlane.xlu1 %315 }
  0xdb   : > { %v300_v9 = vpop.xlane.xlu0 %299 }
  0xe3   : > { %v311_v11 = vpop.xlane.xlu0 %310 }
  0xe4   : > { %v319_v13 = vsel %vm318_vm4, %v300_v9, %v311_v11 }
  0xe5   : > { %v321_v14 = vsel %vm320_vm5, %v319_v13, %v316_v10 }
  0xe6   : > { %v322_v15 = vadd.f32 %v321_v14, %v317_v12 }
  0xe8   : > { %324 = vst.msk [vmem:[%s202_s24] sm:$0xf] %vm207_vm3, %v322_v15 }
  0xe9 PF: > { %s12_s11 = sadd.s32 1, %s474_s11   ;;  %s549_s9 = smov %s470_s10 }
  0xea   : > { %p9_p5 = scmp.ge.s32.totalorder %s12_s11, 4   ;;  %s550_s10 = smov %s552_s12 }
  0xec   :  { %11 = sbr.rel (!%p9_p5) target bundleno = 2 (0x2), region = 65 }

</bundles_post_ra>
